<compile_context>
chip_gen: v5e
topology: v5e:2x2
jax: 0.10.0
libtpu: 0.0.40
codegen_flags: <defaults>
</compile_context>

<pallas_src>
import functools

import jax
import jax.numpy as jnp
from jax.experimental import pallas as pl
from jax.experimental.pallas import tpu as pltpu


def _round_up(n, m):
    return ((n + m - 1) // m) * m


def matern52_kernel(grid_ref, x_ref, w_ref, o_ref, basis_ref, *,
                    G, F, sqrt5_over_h, five_over_3h2):
    """One grid step = one batch tile.

    grid_ref : (G,)        f32 in SMEM (grid points)
    x_ref    : (TB, F)     f32 lane-dense batch tile
    w_ref    : (G*F, Opad) f32 resident weight, g-major rows (row g*F + f)
    o_ref    : (TB, Opad)  output tile (lane-dense)
    basis_ref: (TB, G*F)   f32 VMEM scratch holding the assembled basis
    """
    xb = x_ref[...]                                       # (TB, F)

    # Build the lane-dense basis slab one grid point at a time (static unroll, G small).
    for g in range(G):
        gv = grid_ref[g]                                  # scalar from SMEM
        dist = jnp.abs(xb - gv)                           # (TB, F)
        s = sqrt5_over_h * dist
        basis_ref[:, g * F:(g + 1) * F] = (
            (1.0 + s + five_over_3h2 * dist * dist) * jnp.exp(-s)
        )

    # Single MXU contraction with K = G*F.
    o_ref[...] = jnp.dot(
        basis_ref[...], w_ref[...], preferred_element_type=jnp.float32
    ).astype(o_ref.dtype)


def matern52_forward(x, grid, spline_weight, *, grid_min, grid_max, num_grids):
    B, F = x.shape
    G = num_grids
    O = spline_weight.shape[1]
    h = (grid_max - grid_min) / (num_grids - 1)

    # ---- layout plumbing (plain JAX; constants / tiny tensors only) ----
    # Lane-dense output: pad weight columns with zeros up to a multiple of 128.
    O_pad = _round_up(O, 128)
    # Re-order the weight g-major so W2[g*F + f, :] == spline_weight[f*G + g, :].
    w2 = jnp.transpose(spline_weight.reshape(F, G, O), (1, 0, 2)).reshape(G * F, O)
    w2 = jnp.pad(w2, ((0, 0), (0, O_pad - O)))

    # Batch tiling: a single parallel grid axis over batch tiles.
    if B <= 256:
        TB = _round_up(B, 8)
        B_pad = TB
    else:
        TB = 256
        B_pad = _round_up(B, TB)
    x_pad = x if B_pad == B else jnp.pad(x, ((0, B_pad - B), (0, 0)))

    kernel = functools.partial(
        matern52_kernel,
        G=G,
        F=F,
        sqrt5_over_h=float(5.0 ** 0.5 / h),
        five_over_3h2=float(5.0 / (3.0 * h * h)),
    )

    out_pad = pl.pallas_call(
        kernel,
        out_shape=jax.ShapeDtypeStruct((B_pad, O_pad), x.dtype),
        grid_spec=pltpu.PrefetchScalarGridSpec(
            num_scalar_prefetch=0,
            grid=(B_pad // TB,),
            in_specs=[
                # grid points: tiny table, scalar reads from SMEM
                pl.BlockSpec(memory_space=pltpu.MemorySpace.SMEM),
                # x: lane-dense batch tile
                pl.BlockSpec((TB, F), lambda b: (b, 0)),
                # weight: fully resident (same block for every batch tile)
                pl.BlockSpec((G * F, O_pad), lambda b: (0, 0)),
            ],
            out_specs=pl.BlockSpec((TB, O_pad), lambda b: (b, 0)),
            scratch_shapes=[pltpu.VMEM((TB, G * F), jnp.float32)],
        ),
        compiler_params=pltpu.CompilerParams(dimension_semantics=("parallel",)),
    )(grid, x_pad, w2)

    return out_pad[:B, :O]


def matern52_ref(x, grid, spline_weight, *, grid_min, grid_max, num_grids):
    """Pure-JAX reference mirroring the PyTorch forward exactly."""
    h = (grid_max - grid_min) / (num_grids - 1)
    sqrt5 = jnp.sqrt(jnp.float32(5.0))
    xe = x[..., None]                                       # (B, F, 1)
    dist = jnp.abs(xe - grid)                               # (B, F, G)
    scale_dist = sqrt5 * dist / h
    basis = (1.0 + scale_dist + 5.0 * dist**2 / (3.0 * h * h)) * jnp.exp(-scale_dist)
    return basis.reshape(x.shape[0], -1) @ spline_weight


if __name__ == "__main__":
    # Module hyperparameters (synthetic, deterministic init — no checkpoint).
    in_features = 32
    out_features = 16
    num_grids = 8
    grid_min = -2.0
    grid_max = 2.0
    spline_scale = 0.1
    batch = 8

    key = jax.random.PRNGKey(0)
    kx, kw = jax.random.split(key)

    x = jax.random.normal(kx, (batch, in_features), dtype=jnp.float32)
    grid = jnp.linspace(grid_min, grid_max, num_grids, dtype=jnp.float32)
    spline_weight = (
        jax.random.normal(kw, (in_features * num_grids, out_features), dtype=jnp.float32)
        * spline_scale
    )

    out = matern52_forward(
        x, grid, spline_weight,
        grid_min=grid_min, grid_max=grid_max, num_grids=num_grids,
    )
    out = jax.block_until_ready(out)

    ref = matern52_ref(
        x, grid, spline_weight,
        grid_min=grid_min, grid_max=grid_max, num_grids=num_grids,
    )

    assert out.shape == (batch, out_features)
    assert jnp.allclose(out, ref, atol=1e-4, rtol=1e-4), (
        f"max abs err = {jnp.max(jnp.abs(out - ref))}"
    )
    print("KERNEL_OK")
</pallas_src>

<mosaic_0001>
module attributes {stable_mosaic.version = 11 : i64} {
  func.func @matern52_kernel(%arg0: i32, %arg1: memref<8xf32, #tpu.memory_space<smem>>, %arg2: memref<8x32xf32, #tpu.memory_space<vmem>>, %arg3: memref<256x128xf32, #tpu.memory_space<vmem>>, %arg4: memref<8x128xf32, #tpu.memory_space<vmem>>, %arg5: memref<8x256xf32, #tpu.memory_space<vmem>>) attributes {dimension_semantics = [#tpu.dimension_semantics<parallel>], iteration_bounds = array<i64: 1>, scalar_prefetch = 0 : i64, scratch_operands = 1 : i64, tpu.core_type = #tpu.core_type<tc>, window_params = [{transform_indices = @transform_0, window_bounds = array<i64: 8>}, {transform_indices = @transform_1, window_bounds = array<i64: 8, 32>}, {pipeline_mode = #tpu.pipeline_mode<synchronous>, transform_indices = @transform_2, window_bounds = array<i64: 256, 128>}, {transform_indices = @transform_3, window_bounds = array<i64: 8, 128>}]} {
    %c0 = arith.constant 0 : index
    %c0_0 = arith.constant 0 : index
    %0 = vector.load %arg2[%c0, %c0_0] : memref<8x32xf32, #tpu.memory_space<vmem>>, vector<8x32xf32>
    %c0_1 = arith.constant 0 : index
    %1 = memref.load %arg1[%c0_1] : memref<8xf32, #tpu.memory_space<smem>>
    %2 = vector.broadcast %1 : f32 to vector<8x32xf32>
    %3 = arith.subf %0, %2 : vector<8x32xf32>
    %4 = math.absf %3 : vector<8x32xf32>
    %cst = arith.constant 3.91311908 : f32
    %5 = vector.broadcast %cst : f32 to vector<8x32xf32>
    %6 = arith.mulf %5, %4 : vector<8x32xf32>
    %cst_2 = arith.constant 1.000000e+00 : f32
    %7 = vector.broadcast %cst_2 : f32 to vector<8x32xf32>
    %8 = arith.addf %7, %6 : vector<8x32xf32>
    %cst_3 = arith.constant 5.10416651 : f32
    %9 = vector.broadcast %cst_3 : f32 to vector<8x32xf32>
    %10 = arith.mulf %9, %4 : vector<8x32xf32>
    %11 = arith.mulf %10, %4 : vector<8x32xf32>
    %12 = arith.addf %8, %11 : vector<8x32xf32>
    %cst_4 = arith.constant 0.000000e+00 : f32
    %13 = vector.broadcast %cst_4 : f32 to vector<8x32xf32>
    %14 = arith.subf %13, %6 : vector<8x32xf32>
    %15 = math.exp %14 : vector<8x32xf32>
    %16 = arith.mulf %12, %15 : vector<8x32xf32>
    %c0_5 = arith.constant 0 : index
    %c0_6 = arith.constant 0 : index
    %17 = vector.load %arg5[%c0_5, %c0_6] : memref<8x256xf32, #tpu.memory_space<vmem>>, vector<8x32xf32>
    tpu.vector_store %arg5[%c0_5, %c0_6], %16 {strides = array<i32>} : memref<8x256xf32, #tpu.memory_space<vmem>>, vector<8x32xf32>,
    %c1 = arith.constant 1 : index
    %18 = memref.load %arg1[%c1] : memref<8xf32, #tpu.memory_space<smem>>
    %19 = vector.broadcast %18 : f32 to vector<8x32xf32>
    %20 = arith.subf %0, %19 : vector<8x32xf32>
    %21 = math.absf %20 : vector<8x32xf32>
    %cst_7 = arith.constant 3.91311908 : f32
    %22 = vector.broadcast %cst_7 : f32 to vector<8x32xf32>
    %23 = arith.mulf %22, %21 : vector<8x32xf32>
    %cst_8 = arith.constant 1.000000e+00 : f32
    %24 = vector.broadcast %cst_8 : f32 to vector<8x32xf32>
    %25 = arith.addf %24, %23 : vector<8x32xf32>
    %cst_9 = arith.constant 5.10416651 : f32
    %26 = vector.broadcast %cst_9 : f32 to vector<8x32xf32>
    %27 = arith.mulf %26, %21 : vector<8x32xf32>
    %28 = arith.mulf %27, %21 : vector<8x32xf32>
    %29 = arith.addf %25, %28 : vector<8x32xf32>
    %cst_10 = arith.constant 0.000000e+00 : f32
    %30 = vector.broadcast %cst_10 : f32 to vector<8x32xf32>
    %31 = arith.subf %30, %23 : vector<8x32xf32>
    %32 = math.exp %31 : vector<8x32xf32>
    %33 = arith.mulf %29, %32 : vector<8x32xf32>
    %c0_11 = arith.constant 0 : index
    %c32 = arith.constant 32 : index
    %34 = vector.load %arg5[%c0_11, %c32] : memref<8x256xf32, #tpu.memory_space<vmem>>, vector<8x32xf32>
    tpu.vector_store %arg5[%c0_11, %c32], %33 {strides = array<i32>} : memref<8x256xf32, #tpu.memory_space<vmem>>, vector<8x32xf32>,
    %c2 = arith.constant 2 : index
    %35 = memref.load %arg1[%c2] : memref<8xf32, #tpu.memory_space<smem>>
    %36 = vector.broadcast %35 : f32 to vector<8x32xf32>
    %37 = arith.subf %0, %36 : vector<8x32xf32>
    %38 = math.absf %37 : vector<8x32xf32>
    %cst_12 = arith.constant 3.91311908 : f32
    %39 = vector.broadcast %cst_12 : f32 to vector<8x32xf32>
    %40 = arith.mulf %39, %38 : vector<8x32xf32>
    %cst_13 = arith.constant 1.000000e+00 : f32
    %41 = vector.broadcast %cst_13 : f32 to vector<8x32xf32>
    %42 = arith.addf %41, %40 : vector<8x32xf32>
    %cst_14 = arith.constant 5.10416651 : f32
    %43 = vector.broadcast %cst_14 : f32 to vector<8x32xf32>
    %44 = arith.mulf %43, %38 : vector<8x32xf32>
    %45 = arith.mulf %44, %38 : vector<8x32xf32>
    %46 = arith.addf %42, %45 : vector<8x32xf32>
    %cst_15 = arith.constant 0.000000e+00 : f32
    %47 = vector.broadcast %cst_15 : f32 to vector<8x32xf32>
    %48 = arith.subf %47, %40 : vector<8x32xf32>
    %49 = math.exp %48 : vector<8x32xf32>
    %50 = arith.mulf %46, %49 : vector<8x32xf32>
    %c0_16 = arith.constant 0 : index
    %c64 = arith.constant 64 : index
    %51 = vector.load %arg5[%c0_16, %c64] : memref<8x256xf32, #tpu.memory_space<vmem>>, vector<8x32xf32>
    tpu.vector_store %arg5[%c0_16, %c64], %50 {strides = array<i32>} : memref<8x256xf32, #tpu.memory_space<vmem>>, vector<8x32xf32>,
    %c3 = arith.constant 3 : index
    %52 = memref.load %arg1[%c3] : memref<8xf32, #tpu.memory_space<smem>>
    %53 = vector.broadcast %52 : f32 to vector<8x32xf32>
    %54 = arith.subf %0, %53 : vector<8x32xf32>
    %55 = math.absf %54 : vector<8x32xf32>
    %cst_17 = arith.constant 3.91311908 : f32
    %56 = vector.broadcast %cst_17 : f32 to vector<8x32xf32>
    %57 = arith.mulf %56, %55 : vector<8x32xf32>
    %cst_18 = arith.constant 1.000000e+00 : f32
    %58 = vector.broadcast %cst_18 : f32 to vector<8x32xf32>
    %59 = arith.addf %58, %57 : vector<8x32xf32>
    %cst_19 = arith.constant 5.10416651 : f32
    %60 = vector.broadcast %cst_19 : f32 to vector<8x32xf32>
    %61 = arith.mulf %60, %55 : vector<8x32xf32>
    %62 = arith.mulf %61, %55 : vector<8x32xf32>
    %63 = arith.addf %59, %62 : vector<8x32xf32>
    %cst_20 = arith.constant 0.000000e+00 : f32
    %64 = vector.broadcast %cst_20 : f32 to vector<8x32xf32>
    %65 = arith.subf %64, %57 : vector<8x32xf32>
    %66 = math.exp %65 : vector<8x32xf32>
    %67 = arith.mulf %63, %66 : vector<8x32xf32>
    %c0_21 = arith.constant 0 : index
    %c96 = arith.constant 96 : index
    %68 = vector.load %arg5[%c0_21, %c96] : memref<8x256xf32, #tpu.memory_space<vmem>>, vector<8x32xf32>
    tpu.vector_store %arg5[%c0_21, %c96], %67 {strides = array<i32>} : memref<8x256xf32, #tpu.memory_space<vmem>>, vector<8x32xf32>,
    %c4 = arith.constant 4 : index
    %69 = memref.load %arg1[%c4] : memref<8xf32, #tpu.memory_space<smem>>
    %70 = vector.broadcast %69 : f32 to vector<8x32xf32>
    %71 = arith.subf %0, %70 : vector<8x32xf32>
    %72 = math.absf %71 : vector<8x32xf32>
    %cst_22 = arith.constant 3.91311908 : f32
    %73 = vector.broadcast %cst_22 : f32 to vector<8x32xf32>
    %74 = arith.mulf %73, %72 : vector<8x32xf32>
    %cst_23 = arith.constant 1.000000e+00 : f32
    %75 = vector.broadcast %cst_23 : f32 to vector<8x32xf32>
    %76 = arith.addf %75, %74 : vector<8x32xf32>
    %cst_24 = arith.constant 5.10416651 : f32
    %77 = vector.broadcast %cst_24 : f32 to vector<8x32xf32>
    %78 = arith.mulf %77, %72 : vector<8x32xf32>
    %79 = arith.mulf %78, %72 : vector<8x32xf32>
    %80 = arith.addf %76, %79 : vector<8x32xf32>
    %cst_25 = arith.constant 0.000000e+00 : f32
    %81 = vector.broadcast %cst_25 : f32 to vector<8x32xf32>
    %82 = arith.subf %81, %74 : vector<8x32xf32>
    %83 = math.exp %82 : vector<8x32xf32>
    %84 = arith.mulf %80, %83 : vector<8x32xf32>
    %c0_26 = arith.constant 0 : index
    %c128 = arith.constant 128 : index
    %85 = vector.load %arg5[%c0_26, %c128] : memref<8x256xf32, #tpu.memory_space<vmem>>, vector<8x32xf32>
    tpu.vector_store %arg5[%c0_26, %c128], %84 {strides = array<i32>} : memref<8x256xf32, #tpu.memory_space<vmem>>, vector<8x32xf32>,
    %c5 = arith.constant 5 : index
    %86 = memref.load %arg1[%c5] : memref<8xf32, #tpu.memory_space<smem>>
    %87 = vector.broadcast %86 : f32 to vector<8x32xf32>
    %88 = arith.subf %0, %87 : vector<8x32xf32>
    %89 = math.absf %88 : vector<8x32xf32>
    %cst_27 = arith.constant 3.91311908 : f32
    %90 = vector.broadcast %cst_27 : f32 to vector<8x32xf32>
    %91 = arith.mulf %90, %89 : vector<8x32xf32>
    %cst_28 = arith.constant 1.000000e+00 : f32
    %92 = vector.broadcast %cst_28 : f32 to vector<8x32xf32>
    %93 = arith.addf %92, %91 : vector<8x32xf32>
    %cst_29 = arith.constant 5.10416651 : f32
    %94 = vector.broadcast %cst_29 : f32 to vector<8x32xf32>
    %95 = arith.mulf %94, %89 : vector<8x32xf32>
    %96 = arith.mulf %95, %89 : vector<8x32xf32>
    %97 = arith.addf %93, %96 : vector<8x32xf32>
    %cst_30 = arith.constant 0.000000e+00 : f32
    %98 = vector.broadcast %cst_30 : f32 to vector<8x32xf32>
    %99 = arith.subf %98, %91 : vector<8x32xf32>
    %100 = math.exp %99 : vector<8x32xf32>
    %101 = arith.mulf %97, %100 : vector<8x32xf32>
    %c0_31 = arith.constant 0 : index
    %c160 = arith.constant 160 : index
    %102 = vector.load %arg5[%c0_31, %c160] : memref<8x256xf32, #tpu.memory_space<vmem>>, vector<8x32xf32>
    tpu.vector_store %arg5[%c0_31, %c160], %101 {strides = array<i32>} : memref<8x256xf32, #tpu.memory_space<vmem>>, vector<8x32xf32>,
    %c6 = arith.constant 6 : index
    %103 = memref.load %arg1[%c6] : memref<8xf32, #tpu.memory_space<smem>>
    %104 = vector.broadcast %103 : f32 to vector<8x32xf32>
    %105 = arith.subf %0, %104 : vector<8x32xf32>
    %106 = math.absf %105 : vector<8x32xf32>
    %cst_32 = arith.constant 3.91311908 : f32
    %107 = vector.broadcast %cst_32 : f32 to vector<8x32xf32>
    %108 = arith.mulf %107, %106 : vector<8x32xf32>
    %cst_33 = arith.constant 1.000000e+00 : f32
    %109 = vector.broadcast %cst_33 : f32 to vector<8x32xf32>
    %110 = arith.addf %109, %108 : vector<8x32xf32>
    %cst_34 = arith.constant 5.10416651 : f32
    %111 = vector.broadcast %cst_34 : f32 to vector<8x32xf32>
    %112 = arith.mulf %111, %106 : vector<8x32xf32>
    %113 = arith.mulf %112, %106 : vector<8x32xf32>
    %114 = arith.addf %110, %113 : vector<8x32xf32>
    %cst_35 = arith.constant 0.000000e+00 : f32
    %115 = vector.broadcast %cst_35 : f32 to vector<8x32xf32>
    %116 = arith.subf %115, %108 : vector<8x32xf32>
    %117 = math.exp %116 : vector<8x32xf32>
    %118 = arith.mulf %114, %117 : vector<8x32xf32>
    %c0_36 = arith.constant 0 : index
    %c192 = arith.constant 192 : index
    %119 = vector.load %arg5[%c0_36, %c192] : memref<8x256xf32, #tpu.memory_space<vmem>>, vector<8x32xf32>
    tpu.vector_store %arg5[%c0_36, %c192], %118 {strides = array<i32>} : memref<8x256xf32, #tpu.memory_space<vmem>>, vector<8x32xf32>,
    %c7 = arith.constant 7 : index
    %120 = memref.load %arg1[%c7] : memref<8xf32, #tpu.memory_space<smem>>
    %121 = vector.broadcast %120 : f32 to vector<8x32xf32>
    %122 = arith.subf %0, %121 : vector<8x32xf32>
    %123 = math.absf %122 : vector<8x32xf32>
    %cst_37 = arith.constant 3.91311908 : f32
    %124 = vector.broadcast %cst_37 : f32 to vector<8x32xf32>
    %125 = arith.mulf %124, %123 : vector<8x32xf32>
    %cst_38 = arith.constant 1.000000e+00 : f32
    %126 = vector.broadcast %cst_38 : f32 to vector<8x32xf32>
    %127 = arith.addf %126, %125 : vector<8x32xf32>
    %cst_39 = arith.constant 5.10416651 : f32
    %128 = vector.broadcast %cst_39 : f32 to vector<8x32xf32>
    %129 = arith.mulf %128, %123 : vector<8x32xf32>
    %130 = arith.mulf %129, %123 : vector<8x32xf32>
    %131 = arith.addf %127, %130 : vector<8x32xf32>
    %cst_40 = arith.constant 0.000000e+00 : f32
    %132 = vector.broadcast %cst_40 : f32 to vector<8x32xf32>
    %133 = arith.subf %132, %125 : vector<8x32xf32>
    %134 = math.exp %133 : vector<8x32xf32>
    %135 = arith.mulf %131, %134 : vector<8x32xf32>
    %c0_41 = arith.constant 0 : index
    %c224 = arith.constant 224 : index
    %136 = vector.load %arg5[%c0_41, %c224] : memref<8x256xf32, #tpu.memory_space<vmem>>, vector<8x32xf32>
    tpu.vector_store %arg5[%c0_41, %c224], %135 {strides = array<i32>} : memref<8x256xf32, #tpu.memory_space<vmem>>, vector<8x32xf32>,
    %c0_42 = arith.constant 0 : index
    %c0_43 = arith.constant 0 : index
    %137 = vector.load %arg5[%c0_42, %c0_43] : memref<8x256xf32, #tpu.memory_space<vmem>>, vector<8x256xf32>
    %c0_44 = arith.constant 0 : index
    %c0_45 = arith.constant 0 : index
    %138 = vector.load %arg3[%c0_44, %c0_45] : memref<256x128xf32, #tpu.memory_space<vmem>>, vector<256x128xf32>
    %cst_46 = arith.constant dense<0.000000e+00> : vector<8x128xf32>
    %139 = tpu.matmul %137, %138, %cst_46 {dimension_numbers = #tpu.dot_dimension_numbers<[1], [0], [0], [1], [0, 0, 1, 1], [], []>} : vector<8x256xf32>, vector<256x128xf32>, vector<8x128xf32> -> vector<8x128xf32>
    %c0_47 = arith.constant 0 : index
    %c0_48 = arith.constant 0 : index
    %140 = vector.load %arg4[%c0_47, %c0_48] : memref<8x128xf32, #tpu.memory_space<vmem>>, vector<8x128xf32>
    tpu.vector_store %arg4[%c0_47, %c0_48], %139 {strides = array<i32>} : memref<8x128xf32, #tpu.memory_space<vmem>>, vector<8x128xf32>,
    return
  }
  func.func @transform_0(%arg0: i32) -> i32 {
    %c0_i32 = arith.constant 0 : i32
    %c0_i32_0 = arith.constant 0 : i32
    return %c0_i32 : i32
  }
  func.func @transform_1(%arg0: i32) -> (i32, i32) {
    %c0_i32 = arith.constant 0 : i32
    %c0_i32_0 = arith.constant 0 : i32
    return %arg0, %c0_i32 : i32, i32
  }
  func.func @transform_2(%arg0: i32) -> (i32, i32) {
    %c0_i32 = arith.constant 0 : i32
    %c0_i32_0 = arith.constant 0 : i32
    %c0_i32_1 = arith.constant 0 : i32
    return %c0_i32, %c0_i32_0 : i32, i32
  }
  func.func @transform_3(%arg0: i32) -> (i32, i32) {
    %c0_i32 = arith.constant 0 : i32
    %c0_i32_0 = arith.constant 0 : i32
    return %arg0, %c0_i32 : i32, i32
  }
}

</mosaic_0001>

<bundles_post_ra>
// kernel: tpu_custom_call.1
= control target key start
LH: loop header
LB: loop body
LE: loop exit
PB: predicated region body
PF: predicated region fallthrough
CT: control target
= control target key end

     0   :  { %8 = vsyncpa [#allocation6], 0  ;;  %s473_s0 = inlined_call_operand.hbm [shape: f32[8], index: 0, kind: input, shape index: {}]   ;;  %s474_s1 = inlined_call_operand.hbm [shape: f32[8,32], index: 1, kind: input, shape index: {}]   ;;  %s475_s2 = inlined_call_operand.hbm [shape: f32[256,128], index: 2, kind: input, shape index: {}]   ;;  %s476_s3 = inlined_call_operand.hbm [shape: f32[8,128], index: 3, kind: output, shape index: {}]  }
   0x1   :  { %9 = vsyncpa [#allocation4], 0 }
   0x2   :  { %10 = vsyncpa [#allocation9], 0 }
   0x3   :  { %11 = vsyncpa [#allocation5], 0  ;;  %s17_s14 = sshll.u32 %s473_s0, 4  ;;  %s26_s17 = sshll.u32 %s474_s1, 4  ;;  %s18_s14 = int_to_ptr.hbm [resolvable:$true] %s17_s14  ;;  %s27_s17 = int_to_ptr.hbm [resolvable:$true] %s26_s17 }
   0x4   :  { %s417_s18 = smov [#allocation3]   ;;  %s418_s19 = smov [#allocation7]  }
   0x5   :  { %20 = dma.hbm_to_smem %s18_s14, 16, %s417_s18, [#allocation6]  }
   0x6   :  { %s28_s20 = sshll.u32 %s418_s19, 4  ;;  %s36_s23 = sshll.u32 %s475_s2, 4  ;;  %s29_s20 = int_to_ptr.vmem [resolvable:$true] %s28_s20  ;;  %s37_s23 = int_to_ptr.hbm [resolvable:$true] %s36_s23 }
   0x7   :  { %31 = dma.hbm_to_vmem [thread:$0]  %s27_s17, 128, %s29_s20, [#allocation4]  }
   0x8   :  { %s419_s24 = smov [#allocation8]   ;;  %s420_s0 = smov 128  }
   0x9   :  { %s38_s25 = sshll.u32 %s419_s24, 4  ;;  %s421_s26 = smov 8   ;;  %s39_s25 = int_to_ptr.vmem [resolvable:$true] %s38_s25 }
   0xa   :  { %44 = dma.hbm_to_vmem [thread:$0]  %s37_s23, 4096, %s39_s25, [#allocation9], %s420_s0, %s420_s0, %s421_s26  }
   0xb   :  { %409 = dma.done.wait [#allocation6], 16  }
   0xc   :  { %410 = vsyncadd [#allocation6], 4294967280 }
   0xd   :  { %411 = dma.done.wait [#allocation4], 128  }
   0xe   :  { %412 = vsyncadd [#allocation4], 4294967168 }
   0xf   :  { %413 = dma.done.wait [#allocation9], 4096  }
  0x10   :  { %414 = vsyncadd [#allocation9], 4294963200 }
  0x11   :  { %57 = sfence }
  0x12   :  { %s293_s1 = sld [smem:[#allocation3 + $0x1]]  ;;  %v455_v0 = vld [vmem:[#allocation7] sm:$0xff]  ;;  %v215_v13 = vld [vmem:[#allocation8 + $0x70] sm:$0xff]  ;;  %v214_v16 = vld [vmem:[#allocation8 + $0x68] sm:$0xff]  ;;  %s422_s4 = smov 32   ;;  %vm72_vm0 = vcmask 261120  }
  0x13   :  { %s294_s27 = sld [smem:[#allocation3 + $0x2]]  ;;  %v216_v12 = vld [vmem:[#allocation8 + $0x78] sm:$0xff]  ;;  %v213_v25 = vld [vmem:[#allocation8 + $0x60] sm:$0xff]  ;;  %v231_v32 = vld [vmem:[#allocation8 + $0xf0] sm:$0xff]  ;;  %s423_s5 = smov 64   ;;  %vm91_vm1 = vcmask 523520  }
  0x14   :  { %s297_s28 = sld [smem:[#allocation3 + $0x5]]  ;;  %233 = vmatpush.msra.mxu0 %v216_v12  ;;  %v232_v26 = vld [vmem:[#allocation8 + $0xf8] sm:$0xff]  ;;  %v230_v37 = vld [vmem:[#allocation8 + $0xe8] sm:$0xff]  ;;  %v211_v43 = vld [vmem:[#allocation8 + $0x50] sm:$0xff]  ;;  %s424_s6 = smov 96   ;;  %vm110_vm2 = vcmask 785920  }
  0x15   :  { %s298_s2 = sld [smem:[#allocation3 + $0x6]]  ;;  %v212_v31 = vld [vmem:[#allocation8 + $0x58] sm:$0xff]  ;;  %253 = vmatpush.msra.mxu1 %v232_v26  ;;  %v229_v44 = vld [vmem:[#allocation8 + $0xe0] sm:$0xff]  ;;  %v210_v51 = vld [vmem:[#allocation8 + $0x48] sm:$0xff]  ;;  %vm129_vm3 = vcmask 1048320   ;;  %s425_s9 = smov [#allocation10]  }
  0x16   :  { %s295_s29 = sld [smem:[#allocation3 + $0x3]]  ;;  %234 = vmatpush.msra.mxu0 %v215_v13  ;;  %v228_v52 = vld [vmem:[#allocation8 + $0xd8] sm:$0xff]  ;;  %v209_v58 = vld [vmem:[#allocation8 + $0x40] sm:$0xff]  ;;  %v227_v59 = vld [vmem:[#allocation8 + $0xd0] sm:$0xff]  ;;  %s279_s10 = sshll.u32 %s425_s9, 4  ;;  %s280_s10 = int_to_ptr.vmem [resolvable:$true] %s279_s10 }
  0x17   :  { %s458_s30 = sld [smem:[#allocation3 + $0x7]]  ;;  %254 = vmatpush.msra.mxu1 %v231_v32  ;;  %v207_v12 = vld [vmem:[#allocation8 + $0x30] sm:$0xff]  ;;  %s281_s13 = sshll.u32 %s476_s3, 4  ;;  %s282_s13 = int_to_ptr.hbm [resolvable:$true] %s281_s13 }
  0x18   :  { %v75_v1 = vstv %s293_s1  ;;  %235 = vmatpush.msra.mxu0 %v214_v16  ;;  %s59_s7 = sld [smem:[#allocation3]] }
  0x19   :  { %v76_v2 = vsub.f32 %v455_v0, %v75_v1  ;;  %v94_v3 = vstv %s294_s27  ;;  %255 = vmatpush.msra.mxu1 %v230_v37  ;;  %s296_s8 = sld [smem:[#allocation3 + $0x4]] }
  0x1a   :  { %v95_v4 = vsub.f32 %v455_v0, %v94_v3  ;;  %v146_v5 = vstv %s297_s28  ;;  %236 = vmatpush.msra.mxu0 %v213_v25 }
  0x1b   :  { %v77_v6 = vand.u32 2147483647, %v76_v2  ;;  %v147_v7 = vsub.f32 %v455_v0, %v146_v5  ;;  %v164_v8 = vstv %s298_s2  ;;  %256 = vmatpush.msra.mxu1 %v229_v44 }
  0x1c   :  { %v96_v9 = vand.u32 2147483647, %v95_v4  ;;  %v165_v10 = vsub.f32 %v455_v0, %v164_v8  ;;  %v113_v11 = vstv %s295_s29  ;;  %237 = vmatpush.msra.mxu0 %v212_v31  ;;  %v226_v8 = vld [vmem:[#allocation8 + $0xc8] sm:$0xff] }
  0x1d   :  { %v78_v14 = vmul.f32 3.913119, %v77_v6  ;;  %v148_v15 = vand.u32 2147483647, %v147_v7  ;;  %v80_v17 = vmul.f32 5.1041665, %v77_v6  ;;  %v114_v23 = vsub.f32 %v455_v0, %v113_v11  ;;  %257 = vmatpush.msra.mxu1 %v228_v52 }
  0x1e   :  { %v97_v18 = vmul.f32 3.913119, %v96_v9  ;;  %v166_v19 = vand.u32 2147483647, %v165_v10  ;;  %v99_v21 = vmul.f32 5.1041665, %v96_v9  ;;  %v182_v30 = vstv %s458_s30  ;;  %238 = vmatpush.msra.mxu0 %v211_v43 }
  0x1f   :  { %v83_v20 = vsub.f32 0.0, %v78_v14  ;;  %v149_v22 = vmul.f32 3.913119, %v148_v15  ;;  %v79_v27 = vadd.f32 1.0, %v78_v14  ;;  %v81_v33 = vmul.f32 %v80_v17, %v77_v6  ;;  %v208_v6 = vld [vmem:[#allocation8 + $0x38] sm:$0xff]  ;;  %258 = vmatpush.msra.mxu1 %v227_v59  ;;  %v203_v52 = vld [vmem:[#allocation8 + $0x10] sm:$0xff] }
  0x20   :  { %v102_v24 = vsub.f32 0.0, %v97_v18  ;;  %v98_v34 = vadd.f32 1.0, %v97_v18  ;;  %v167_v36 = vmul.f32 3.913119, %v166_v19  ;;  %v100_v38 = vmul.f32 %v99_v21, %v96_v9  ;;  %239 = vmatpush.msra.mxu0 %v210_v51  ;;  %v206_v18 = vld [vmem:[#allocation8 + $0x28] sm:$0xff]  ;;  %v224_v51 = vld [vmem:[#allocation8 + $0xb8] sm:$0xff] }
  0x21   :  { %v84_v28 = vmul.f32 1.442695, %v83_v20  ;;  %v154_v29 = vsub.f32 0.0, %v149_v22  ;;  %v115_v40 = vand.u32 2147483647, %v114_v23  ;;  %v82_v47 = vadd.f32 %v81_v33, %v79_v27  ;;  %259 = vmatpush.msra.mxu1 %v226_v8  ;;  %v201_v59 = vld [vmem:[#allocation8] sm:$0xff] }
  0x22   :  { %v103_v35 = vmul.f32 1.442695, %v102_v24  ;;  %v151_v41 = vmul.f32 5.1041665, %v148_v15  ;;  %v172_v42 = vsub.f32 0.0, %v167_v36  ;;  %v183_v50 = vsub.f32 %v455_v0, %v182_v30  ;;  %240 = vmatpush.msra.mxu0 %v209_v58 }
  0x23   :  { %309 = vpow2.f32 %v84_v28  ;;  %v155_v39 = vmul.f32 1.442695, %v154_v29  ;;  %v169_v45 = vmul.f32 5.1041665, %v166_v19  ;;  %v116_v46 = vmul.f32 3.913119, %v115_v40 }
  0x24   :  { %311 = vpow2.f32 %v103_v35  ;;  %v173_v48 = vmul.f32 1.442695, %v172_v42  ;;  %v118_v49 = vmul.f32 5.1041665, %v115_v40  ;;  %v101_v53 = vadd.f32 %v100_v38, %v98_v34  ;;  %241 = vmatpush.msra.mxu0 %v208_v6 }
  0x25   :  { %313 = vpow2.f32 %v155_v39  ;;  %v121_v54 = vsub.f32 0.0, %v116_v46  ;;  %v150_v55 = vadd.f32 1.0, %v149_v22  ;;  %v152_v56 = vmul.f32 %v151_v41, %v148_v15 }
  0x26   :  { %315 = vpow2.f32 %v173_v48  ;;  %v184_v57 = vand.u32 2147483647, %v183_v50  ;;  %v168_v61 = vadd.f32 1.0, %v167_v36  ;;  %v170_v62 = vmul.f32 %v169_v45, %v166_v19  ;;  %242 = vmatpush.msra.mxu0 %v207_v12  ;;  %v225_v48 = vld [vmem:[#allocation8 + $0xc0] sm:$0xff]  ;;  %v204_v50 = vld [vmem:[#allocation8 + $0x18] sm:$0xff] }
  0x27   :  { %v122_v63 = vmul.f32 1.442695, %v121_v54  ;;  %v117_v3 = vadd.f32 1.0, %v116_v46  ;;  %v119_v4 = vmul.f32 %v118_v49, %v115_v40  ;;  %v153_v9 = vadd.f32 %v152_v56, %v150_v55  ;;  %260 = vmatpush.msra.mxu1 %v225_v48  ;;  %v202_v56 = vld [vmem:[#allocation8 + $0x8] sm:$0xff] }
  0x28   :  { %v185_v5 = vmul.f32 3.913119, %v184_v57  ;;  %v187_v10 = vmul.f32 5.1041665, %v184_v57  ;;  %v171_v14 = vadd.f32 %v170_v62, %v168_v61  ;;  %243 = vmatpush.msra.mxu0 %v206_v18  ;;  %v60_v28 = vstv %s59_s7  ;;  %v220_v61 = vld [vmem:[#allocation8 + $0x98] sm:$0xff]  ;;  %v219_v62 = vld [vmem:[#allocation8 + $0x90] sm:$0xff] }
  0x29   :  { %v310_v60 = vpop.eup %309  ;;  %317 = vpow2.f32 %v122_v63  ;;  %v120_v16 = vadd.f32 %v119_v4, %v117_v3  ;;  %v61_v29 = vsub.f32 %v455_v0, %v60_v28  ;;  %v132_v33 = vstv %s296_s8  ;;  %261 = vmatpush.msra.mxu1 %v224_v51  ;;  %v218_v63 = vld [vmem:[#allocation8 + $0x88] sm:$0xff] }
  0x2a   :  { %v312_v1 = vpop.eup %311  ;;  %v86_v2 = vmul.f32 %v310_v60, %v82_v47  ;;  %v190_v11 = vsub.f32 0.0, %v185_v5  ;;  %v186_v20 = vadd.f32 1.0, %v185_v5  ;;  %v188_v21 = vmul.f32 %v187_v10, %v184_v57  ;;  %v205_v47 = vld [vmem:[#allocation8 + $0x20] sm:$0xff]  ;;  %v222_v57 = vld [vmem:[#allocation8 + $0xa8] sm:$0xff] }
  0x2b   :  { %v105_v7 = vmul.f32 %v312_v1, %v101_v53  ;;  %v314_v13 = vpop.eup %313  ;;  %v62_v30 = vand.u32 2147483647, %v61_v29  ;;  %v133_v35 = vsub.f32 %v455_v0, %v132_v33  ;;  %244 = vmatpush.msra.mxu0 %v205_v47  ;;  %v223_v53 = vld [vmem:[#allocation8 + $0xb0] sm:$0xff]  ;;  %v221_v60 = vld [vmem:[#allocation8 + $0xa0] sm:$0xff] }
  0x2c   :  { %88 = vrot.lane.b32.xlu0 %v86_v2, %s422_s4  ;;  %v316_v15 = vpop.eup %315  ;;  %v191_v17 = vmul.f32 1.442695, %v190_v11  ;;  %v157_v19 = vmul.f32 %v314_v13, %v153_v9  ;;  %v189_v25 = vadd.f32 %v188_v21, %v186_v20  ;;  %262 = vmatpush.msra.mxu1 %v223_v53  ;;  %v217_v1 = vld [vmem:[#allocation8 + $0x80] sm:$0xff] }
  0x2d   :  { %107 = vrot.lane.b32.xlu1 %v105_v7, %s423_s5  ;;  %v175_v23 = vmul.f32 %v316_v15, %v171_v14  ;;  %v63_v31 = vmul.f32 3.913119, %v62_v30  ;;  %v134_v36 = vand.u32 2147483647, %v133_v35  ;;  %v65_v37 = vmul.f32 5.1041665, %v62_v30  ;;  %245 = vmatpush.msra.mxu0 %v204_v50 }
  0x2e   :  { %319 = vpow2.f32 %v191_v17  ;;  %263 = vmatpush.msra.mxu1 %v222_v57 }
  0x2f   :  { %v318_v22 = vpop.eup %317  ;;  %v68_v32 = vsub.f32 0.0, %v63_v31  ;;  %v135_v38 = vmul.f32 3.913119, %v134_v36  ;;  %v64_v39 = vadd.f32 1.0, %v63_v31  ;;  %v66_v40 = vmul.f32 %v65_v37, %v62_v30  ;;  %246 = vmatpush.msra.mxu0 %v203_v52 }
  0x30   :  { %v124_v24 = vmul.f32 %v318_v22, %v120_v16  ;;  %v137_v46 = vmul.f32 5.1041665, %v134_v36  ;;  %264 = vmatpush.msra.mxu1 %v221_v60 }
  0x31   :  { %v69_v34 = vmul.f32 1.442695, %v68_v32  ;;  %v140_v41 = vsub.f32 0.0, %v135_v38  ;;  %v67_v42 = vadd.f32 %v66_v40, %v64_v39  ;;  %v136_v0 = vadd.f32 1.0, %v135_v38  ;;  %247 = vmatpush.msra.mxu0 %v202_v56 }
  0x32   :  { %126 = vrot.lane.b32.xlu2 %v124_v24, %s424_s6  ;;  %v138_v49 = vmul.f32 %v137_v46, %v134_v36  ;;  %265 = vmatpush.msra.mxu1 %v220_v61 }
  0x33   :  { %321 = vpow2.f32 %v69_v34  ;;  %v141_v44 = vmul.f32 1.442695, %v140_v41  ;;  %248 = vmatpush.msra.mxu0 %v201_v59 }
  0x34   :  { %159 = vrot.lane.b32.xlu0 %v157_v19, %s422_s4  ;;  %v320_v26 = vpop.eup %319  ;;  %v139_v54 = vadd.f32 %v138_v49, %v136_v0  ;;  %266 = vmatpush.msra.mxu1 %v219_v62 }
  0x35   :  { %177 = vrot.lane.b32.xlu1 %v175_v23, %s423_s5  ;;  %v193_v27 = vmul.f32 %v320_v26, %v189_v25  ;;  %323 = vpow2.f32 %v141_v44 }
  0x36   :  { %267 = vmatpush.msra.mxu1 %v218_v63 }
  0x38   :  { %268 = vmatpush.msra.mxu1 %v217_v1 }
  0x39   :  { %v322_v43 = vpop.eup %321 }
  0x3a   :  { %195 = vrot.lane.b32.xlu2 %v193_v27, %s424_s6  ;;  %v71_v45 = vmul.f32 %v322_v43, %v67_v42 }
  0x3b   :  { %v324_v55 = vpop.eup %323 }
  0x3c   :  { %73 = vst.msk [vmem:[#allocation2] sm:$0xff] %vm72_vm0, %v71_v45  ;;  %v143_v58 = vmul.f32 %v324_v55, %v139_v54 }
  0x3e   :  { %144 = vst.msk [vmem:[#allocation2 + $0x8] sm:$0xff] %vm72_vm0, %v143_v58 }
  0x8c   :  { %v127_v2 = vpop.permute.xlu2 %126 }
  0x94   :  { %v196_v6 = vpop.permute.xlu2 %195 }
  0x9e   :  { %v89_v3 = vpop.permute.xlu0 %88 }
  0x9f   :  { %92 = vst.msk [vmem:[#allocation2] sm:$0xff] %vm91_vm1, %v89_v3  ;;  %v108_v4 = vpop.permute.xlu1 %107 }
  0xa0   :  { %111 = vst.msk [vmem:[#allocation2] sm:$0xff] %vm110_vm2, %v108_v4 }
  0xa1   :  { %130 = vst.msk [vmem:[#allocation2] sm:$0xff] %vm129_vm3, %v127_v2 }
  0xa6   :  { %v160_v5 = vpop.permute.xlu0 %159 }
  0xa7   :  { %162 = vst.msk [vmem:[#allocation2 + $0x8] sm:$0xff] %vm91_vm1, %v160_v5  ;;  %v178_v7 = vpop.permute.xlu1 %177 }
  0xa8   :  { %180 = vst.msk [vmem:[#allocation2 + $0x8] sm:$0xff] %vm110_vm2, %v178_v7  ;;  %v199_v8 = vld [vmem:[#allocation2] sm:$0xff] }
  0xa9   :  { %198 = vst.msk [vmem:[#allocation2 + $0x8] sm:$0xff] %vm129_vm3, %v196_v6  ;;  %249 = vmatmul.f32.vlgmr.msra.gmra.mxu0 %v199_v8 }
  0xb0   :  { %v200_v9 = vld [vmem:[#allocation2 + $0x8] sm:$0xff] }
  0xb1   :  { %269 = vmatmul.f32.vlgmr.msra.gmra.mxu1 %v200_v9 }
 0x126   :  { %v250_v10 = vpop.f32.mrf.mxu0 }
 0x12e   :  { %v270_v11 = vpop.f32.mrf.mxu1 }
 0x12f   :  { %v271_v12 = vadd.f32 %v270_v11, %v250_v10 }
 0x131   :  { %273 = vst [vmem:[#allocation10] sm:$0xff] %v271_v12 }
 0x132   :  { %284 = dma.vmem_to_hbm [thread:$0]  %s280_s10, 128, %s282_s13, [#allocation5]  }
 0x133   :  { %415 = dma.done.wait [#allocation5], 128  }
 0x134   :  { %416 = vsyncadd [#allocation5], 4294967168 }
 0x135   :  { %289 = vsyncpa [#allocation4], 1 }
 0x136   :  { %290 = vsyncpa [#allocation9], 1 }
 0x137   :  { %291 = vsyncpa [#allocation5], 1 }
 0x138   :  { %292 = vsyncpa [#allocation6], 1 }

</bundles_post_ra>
